<compile_context>
chip_gen: v6e
topology: v6e:2x2x1
jax: 0.10.0
libtpu: 0.0.40
codegen_flags: <defaults>
</compile_context>

<pallas_src>
import jax
import jax.numpy as jnp
from jax.experimental import pallas as pl
from jax.experimental.pallas import tpu as pltpu


# ---------------------------------------------------------------------------
# Kernel
# ---------------------------------------------------------------------------
def _brightness_contrast_kernel(x_ref, coef_ref, o_ref):
    # x_ref:    (rows, HW)  input tile (compute in f32)
    # coef_ref: (rows, 2)   f32 packed [c1, c2];  out = x*c1 + mean(x)*c2
    x = x_ref[...].astype(jnp.float32)
    c = coef_ref[...]
    c1 = c[:, 0:1]
    c2 = c[:, 1:2]

    m = jnp.mean(x, axis=-1, keepdims=True)   # per-(b,c) spatial mean (lane reduce)
    o_ref[...] = (x * c1 + m * c2).astype(o_ref.dtype)


# ---------------------------------------------------------------------------
# Tiling helper
# ---------------------------------------------------------------------------
def _choose_tiling(R, HW, itemsize):
    """Pick rows-per-block and a VMEM limit.

    Returns (rows, vmem_limit_bytes).  rows is a multiple of 8 (or == R when
    R <= 8); the grid uses cdiv so R need not be divisible by rows.
    """
    # Per-generation heuristics (fall back to the v6e/v7x defaults).
    target_bytes = 4 << 20
    vmem_limit = 48 << 20
    try:
        kind = jax.devices()[0].device_kind.lower()
        if "v5 lite" in kind or "v5e" in kind or "v5litepod" in kind:
            target_bytes = 2 << 20     # larger tiles buy nothing at ~0.8 TB/s
            vmem_limit = 32 << 20
    except Exception:
        pass

    row_bytes = HW * itemsize
    if R <= 8:
        rows = R
    else:
        # Largest multiple-of-8 row count under the byte budget.
        cap = max(8, (target_bytes // max(row_bytes, 1)) // 8 * 8)
        # Force >= 2 grid steps (when possible) so both v7x TensorCores run.
        split = max(8, (((R + 1) // 2) + 7) // 8 * 8)
        rows = min(R, cap, split)

    # Hard guard: double-buffered in + out blocks (+ tiny coef blocks) must fit.
    need = 2 * (rows * HW * itemsize      # input block
                + rows * HW * itemsize    # output block
                + rows * 2 * 4)           # packed coefficients
    need += 1 << 16                       # headroom
    if need > vmem_limit:
        # Raise the scoped limit, but stay under the smallest physical VMEM
        # across generations (v7x: 64 MiB per TensorCore).
        bumped = min(56 << 20, ((need + (1 << 20) - 1) >> 20) << 20)
        if need > bumped:
            # TODO(synk): for very large H*W add a second grid axis over HW
            # chunks with a two-pass mean (sum-accumulator pass, then apply).
            raise ValueError(
                f"MSIBrightnessContrast: minimal block ({need >> 20} MiB "
                f"double-buffered) exceeds usable VMEM; H*W too large for the "
                f"single-pass kernel.")
        vmem_limit = bumped
    return rows, vmem_limit


# ---------------------------------------------------------------------------
# Pallas launch
# ---------------------------------------------------------------------------
def apply_brightness_contrast(x, eff_scale, eff_alpha, *, donate_input=False):
    """x: (B, C, H, W); eff_scale/eff_alpha: (B,) f32 with 1.0 meaning 'skip'."""
    B, C, H, W = x.shape
    R, HW = B * C, H * W

    x2 = x.reshape(R, HW)                                   # lane-dense layout

    s = eff_scale.astype(jnp.float32)
    a = eff_alpha.astype(jnp.float32)
    c1 = s * a                                              # multiplies x
    c2 = s * (1.0 - a)                                      # multiplies mean(x)
    coef = jnp.stack([c1, c2], axis=-1)                     # (B, 2)
    coef = jnp.broadcast_to(coef[:, None, :], (B, C, 2)).reshape(R, 2)

    rows, vmem_limit = _choose_tiling(R, HW, x.dtype.itemsize)
    grid = (pl.cdiv(R, rows),)

    cost = pl.CostEstimate(
        flops=int(3 * R * HW),
        transcendentals=0,
        bytes_accessed=int(2 * R * HW * x.dtype.itemsize + 2 * R * 4),
    )

    kwargs = {}
    if donate_input:
        # Alias x's HBM buffer to the output; the caller must also donate x at
        # its own jit boundary for XLA to actually reuse the buffer.
        kwargs["input_output_aliases"] = {0: 0}

    out2 = pl.pallas_call(
        _brightness_contrast_kernel,
        out_shape=jax.ShapeDtypeStruct((R, HW), x.dtype),
        grid_spec=pltpu.PrefetchScalarGridSpec(
            num_scalar_prefetch=0,
            grid=grid,
            in_specs=[
                pl.BlockSpec((rows, HW), lambda i: (i, 0)),
                pl.BlockSpec((rows, 2), lambda i: (i, 0)),
            ],
            out_specs=pl.BlockSpec((rows, HW), lambda i: (i, 0)),
        ),
        compiler_params=pltpu.CompilerParams(
            dimension_semantics=("parallel",),
            vmem_limit_bytes=vmem_limit,
        ),
        cost_estimate=cost,
        **kwargs,
    )(x2, coef)

    return out2.reshape(B, C, H, W)


# ---------------------------------------------------------------------------
# Module-equivalent wrapper (randomness from an explicit JAX key)
# ---------------------------------------------------------------------------
def sample_params(key, B, brightness=0.4, contrast=0.4,
                  p_brightness=0.8, p_contrast=0.8):
    kb, ks, kc, ka = jax.random.split(key, 4)
    apply_b = jax.random.uniform(kb, (B,)) < p_brightness
    scale = 1.0 + jax.random.uniform(ks, (B,), minval=-brightness, maxval=brightness)
    apply_c = jax.random.uniform(kc, (B,)) < p_contrast
    alpha = 1.0 + jax.random.uniform(ka, (B,), minval=-contrast, maxval=contrast)
    # Mirror the `if self.p_* > 0` guards: disable the stage entirely when p == 0.
    if p_brightness <= 0:
        apply_b = jnp.zeros_like(apply_b)
    if p_contrast <= 0:
        apply_c = jnp.zeros_like(apply_c)
    return scale, alpha, apply_b, apply_c


def msi_brightness_contrast(x, key, brightness=0.4, contrast=0.4,
                            p_brightness=0.8, p_contrast=0.8,
                            donate_input=False):
    """JAX/Pallas equivalent of MSIBrightnessContrast.forward."""
    B = x.shape[0]
    scale, alpha, apply_b, apply_c = sample_params(
        key, B, brightness, contrast, p_brightness, p_contrast)
    eff_scale = jnp.where(apply_b, scale, 1.0)
    eff_alpha = jnp.where(apply_c, alpha, 1.0)
    return apply_brightness_contrast(x, eff_scale, eff_alpha,
                                     donate_input=donate_input)


# ---------------------------------------------------------------------------
# Pure-JAX reference (matches the PyTorch module's where-based semantics)
# ---------------------------------------------------------------------------
def _reference(x, scale, alpha, apply_b, apply_c):
    s = scale.reshape(-1, 1, 1, 1)
    a = alpha.reshape(-1, 1, 1, 1)
    ab = apply_b.reshape(-1, 1, 1, 1)
    ac = apply_c.reshape(-1, 1, 1, 1)
    x = jnp.where(ab, x * s, x)
    mean = jnp.mean(x, axis=(2, 3), keepdims=True)
    x = jnp.where(ac, (x - mean) * a + mean, x)
    return x


if __name__ == "__main__":
    key = jax.random.PRNGKey(0)
    kx, kp = jax.random.split(key)

    B, C, H, W = 2, 4, 16, 16
    x = jax.random.normal(kx, (B, C, H, W), dtype=jnp.float32)

    out = jax.block_until_ready(msi_brightness_contrast(x, kp))

    # Recompute the same per-image params and check against the reference.
    scale, alpha, apply_b, apply_c = sample_params(kp, B)
    ref = _reference(x, scale, alpha, apply_b, apply_c)
    assert out.shape == x.shape and out.dtype == x.dtype
    assert jnp.allclose(out, ref, atol=1e-5, rtol=1e-5), "mismatch vs reference"

    print("KERNEL_OK")
</pallas_src>

<mosaic_0001>
module attributes {stable_mosaic.version = 11 : i64} {
  func.func @_brightness_contrast_kernel(%arg0: i32, %arg1: memref<8x256xf32, #tpu.memory_space<vmem>>, %arg2: memref<8x2xf32, #tpu.memory_space<vmem>>, %arg3: memref<8x256xf32, #tpu.memory_space<vmem>>) attributes {dimension_semantics = [#tpu.dimension_semantics<parallel>], iteration_bounds = array<i64: 1>, scalar_prefetch = 0 : i64, scratch_operands = 0 : i64, tpu.core_type = #tpu.core_type<tc>, window_params = [{transform_indices = @transform_0, window_bounds = array<i64: 8, 256>}, {transform_indices = @transform_1, window_bounds = array<i64: 8, 2>}, {transform_indices = @transform_2, window_bounds = array<i64: 8, 256>}]} {
    %c0 = arith.constant 0 : index
    %c0_0 = arith.constant 0 : index
    %0 = vector.load %arg1[%c0, %c0_0] : memref<8x256xf32, #tpu.memory_space<vmem>>, vector<8x256xf32>
    %c0_1 = arith.constant 0 : index
    %c0_2 = arith.constant 0 : index
    %1 = vector.load %arg2[%c0_1, %c0_2] : memref<8x2xf32, #tpu.memory_space<vmem>>, vector<8x2xf32>
    %2 = vector.extract_strided_slice %1 {offsets = [0, 0], sizes = [8, 1], strides = [1, 1]} : vector<8x2xf32> to vector<8x1xf32>
    %3 = vector.extract_strided_slice %1 {offsets = [0, 1], sizes = [8, 1], strides = [1, 1]} : vector<8x2xf32> to vector<8x1xf32>
    %cst = arith.constant dense<0.000000e+00> : vector<8xf32>
    %4 = vector.multi_reduction <add>, %0, %cst [1] : vector<8x256xf32> to vector<8xf32>
    %5 = vector.shape_cast %4 : vector<8xf32> to vector<8x1xf32>
    %cst_3 = arith.constant 2.560000e+02 : f32
    %6 = vector.broadcast %cst_3 : f32 to vector<8x1xf32>
    %7 = arith.divf %5, %6 : vector<8x1xf32>
    %8 = vector.broadcast %2 : vector<8x1xf32> to vector<8x256xf32>
    %9 = arith.mulf %0, %8 : vector<8x256xf32>
    %10 = arith.mulf %7, %3 : vector<8x1xf32>
    %11 = vector.broadcast %10 : vector<8x1xf32> to vector<8x256xf32>
    %12 = arith.addf %9, %11 : vector<8x256xf32>
    %c0_4 = arith.constant 0 : index
    %c0_5 = arith.constant 0 : index
    %13 = vector.load %arg3[%c0_4, %c0_5] : memref<8x256xf32, #tpu.memory_space<vmem>>, vector<8x256xf32>
    tpu.vector_store %arg3[%c0_4, %c0_5], %12 {strides = array<i32>} : memref<8x256xf32, #tpu.memory_space<vmem>>, vector<8x256xf32>,
    return
  }
  func.func @transform_0(%arg0: i32) -> (i32, i32) {
    %c0_i32 = arith.constant 0 : i32
    %c0_i32_0 = arith.constant 0 : i32
    return %arg0, %c0_i32 : i32, i32
  }
  func.func @transform_1(%arg0: i32) -> (i32, i32) {
    %c0_i32 = arith.constant 0 : i32
    %c0_i32_0 = arith.constant 0 : i32
    return %arg0, %c0_i32 : i32, i32
  }
  func.func @transform_2(%arg0: i32) -> (i32, i32) {
    %c0_i32 = arith.constant 0 : i32
    %c0_i32_0 = arith.constant 0 : i32
    return %arg0, %c0_i32 : i32, i32
  }
}

</mosaic_0001>

<bundles_post_ra>
// kernel: tpu_custom_call.1
= control target key start
LH: loop header
LB: loop body
LE: loop exit
PB: predicated region body
PF: predicated region fallthrough
CT: control target
= control target key end

     0   :  { %7 = vsyncpa [#allocation3], 0  ;;  %s143_s0 = inlined_call_operand.hbm [shape: f32[8,256], index: 0, kind: input, shape index: {}]   ;;  %s144_s1 = inlined_call_operand.vmem [shape: f32[8,2], index: 1, kind: input, shape index: {}]   ;;  %s145_s2 = inlined_call_operand.hbm [shape: f32[8,256], index: 2, kind: output, shape index: {}]  }
   0x1   :  { %8 = vsyncpa [#allocation4], 0  ;;  %s115_s9 = smov [#allocation2]  }
   0x2   :  { %s15_s10 = sshll.u32 %s115_s9, 4  ;;  %s16_s10 = int_to_ptr.vmem [resolvable:$true] %s15_s10 }
   0x3   :  { %s79_s11 = scalar_lea.vmem %s16_s10, 256  ;;  %p84_p1 = scmp.lt.s32.totalorder %s16_s10, %s16_s10 }
   0x4   :  { %p80_p0 = scmp.ne.s32.totalorder %s16_s10, %s79_s11  ;;  %p85_p2 = scmp.lt.s32.totalorder %s79_s11, %s79_s11 }
   0x6   :  { %p86_p3 = por %p85_p2, %p84_p1 }
   0x8   :  { %p87_p4 = pnand %p86_p3, %p80_p0 }
   0xa   :  { %90 = shalt.err (!%p87_p4)
}
   0xb   :  { %18 = dma.hbm_to_vmem [thread:$0]  %s143_s0, 256, %s16_s10, [#allocation3]  }
   0xc   :  { %111 = dma.done.wait [#allocation3], 256  }
   0xd   :  { %112 = vsyncadd [#allocation3], 4294967040  ;;  %v24_v0 = vld [vmem:[#allocation2] sm:$0xff]  ;;  %v25_v1 = vld [vmem:[#allocation2 + $0x8] sm:$0xff]  ;;  %v116_v3 = vmov 0   ;;  %v117_v4 = vmov 1  }
   0xe   :  { %v27_v2 = vadd.f32 %v25_v1, %v24_v0  ;;  %68 = vset.pattern.permute.xlu0 %v116_v3  ;;  %69 = vset.pattern.permute.xlu1 %v117_v4  ;;  %v26_v5 = vld [vmem:[%s144_s1] sm:$0xff]  ;;  %s118_s0 = smov [#allocation5]  }
   0xf   :  { %s55_s16 = sshll.u32 %s118_s0, 4  ;;  %s56_s16 = int_to_ptr.vmem [resolvable:$true] %s55_s16 }
  0x10   :  { %28 = vadd.xlane.f32.xlu0 %v27_v2  ;;  %s91_s17 = scalar_lea.vmem %s56_s16, 256  ;;  %p96_p6 = scmp.lt.s32.totalorder %s56_s16, %s56_s16 }
  0x11   :  { %p92_p5 = scmp.ne.s32.totalorder %s56_s16, %s91_s17  ;;  %p97_p7 = scmp.lt.s32.totalorder %s91_s17, %s91_s17 }
  0x13   :  { %p98_p8 = por %p97_p7, %p96_p6 }
  0x15   :  { %p99_p9 = pnand %p98_p8, %p92_p5 }
  0x26   :  { %34 = vperm.xlu0 %68, %v26_v5  }
  0x2a   :  { %70 = vset.pattern.permute.xlu0 %v117_v4 }
  0x99   :  { %v29_v6 = vpop.xlane.xlu0 %28 }
  0x9a   :  { %v31_v7 = vmul.f32 0.00390625, %v29_v6 }
  0x9c   :  { %v39_v8 = vmul.f32 %v31_v7, %v26_v5 }
  0x9e   :  { %42 = vperm.xlu1 %69, %v39_v8  }
  0xa1   :  { %v35_v9 = vpop.permute.xlu0 %34 }
  0xa2   :  { %v37_v10 = vmul.f32 %v35_v9, %v24_v0  ;;  %v38_v11 = vmul.f32 %v35_v9, %v25_v1 }
 0x119   :  { %v43_v12 = vpop.permute.xlu1 %42 }
 0x11a   :  { %v45_v13 = vadd.f32 %v43_v12, %v37_v10  ;;  %v46_v14 = vadd.f32 %v43_v12, %v38_v11 }
 0x11c   :  { %47 = vst [vmem:[#allocation5] sm:$0xff] %v45_v13  ;;  %48 = vst [vmem:[#allocation5 + $0x8] sm:$0xff] %v46_v14 }
 0x11d   :  { %102 = shalt.err (!%p99_p9)
}
 0x11e   :  { %58 = dma.vmem_to_hbm [thread:$0]  %s56_s16, 256, %s145_s2, [#allocation4]  }
 0x11f   :  { %113 = dma.done.wait [#allocation4], 256  }
 0x120   :  { %114 = vsyncadd [#allocation4], 4294967040 }
 0x121   :  { %62 = vsyncpa [#allocation3], 1 }
 0x122   :  { %63 = vsyncpa [#allocation4], 1 }

</bundles_post_ra>
